<compile_context>
chip_gen: v6e
topology: v6e:2x2x1
jax: 0.10.0
libtpu: 0.0.40
codegen_flags: <defaults>
</compile_context>

<pallas_src>
import functools

import jax
import jax.numpy as jnp
from jax.experimental import pallas as pl
from jax.experimental.pallas import tpu as pltpu

BN_EPS = 1e-5
LANES = 128          # lane-dense width of every packed block and of the output


def _round8(n):
    return (n + 7) // 8 * 8


# ------------------------------ Fused kernel --------------------------------

def make_fused_kernel(layout, block_batch):
    """Whole-forward kernel for a fixed packed-parameter layout.

    layout["blocks"]: tuple of (w_off, k, b_off) for the sequential trunk
        (hidden layers, merged branch layer 0, merged deeper branch layers);
        each applies  h = relu(h @ slab[w_off:w_off+k] + slab[b_off]).
    layout["head"]:   (w_off, k, b_off) for the merged output heads.
    """
    half = layout["half"]
    trunk = layout["blocks"]
    hw_off, hk, hb_off = layout["head"]

    def kernel(x_ref, slab_ref, out_ref):
        # Build the batch-stacked [a,b] / [b,a] input.  The input BatchNorm is
        # folded into the first weight block (its affine is tiled identically
        # over both halves, so it commutes with the half swap).  The half swap
        # stays a lane slice + concat: proven lowering for a 32-lane dim
        # (pltpu.roll on a sub-128-lane axis is not guaranteed to lower).
        x = x_ref[...]                                             # [B, 2*half]
        x_swap = jnp.concatenate([x[:, half:], x[:, :half]], axis=1)
        h = jnp.concatenate([x, x_swap], axis=0)                   # [2B, 2*half]

        # Sequential trunk: Linear -> ReLU (BN folded into the next block,
        # Dropout == identity in eval mode).  Every block output is 128 lanes.
        for (w_off, k, b_off) in trunk:
            w = slab_ref[w_off:w_off + k, :]                       # [k, 128]
            b = slab_ref[b_off:b_off + 1, :]                       # [1, 128]
            h = jnp.maximum(
                jnp.dot(h, w, preferred_element_type=jnp.float32) + b, 0.0)

        # Average a->b and b->a paths BEFORE the heads (exact identity), then
        # run BOTH heads as one block-structured matmul -> one lane-dense
        # [B,128] store; the wrapper slices per-head columns.
        z = (h[:block_batch, :] + h[block_batch:, :]) * 0.5        # [B, 128]
        wo = slab_ref[hw_off:hw_off + hk, :]
        bo = slab_ref[hb_off:hb_off + 1, :]
        o = jnp.dot(z, wo, preferred_element_type=jnp.float32) + bo
        out_ref[...] = o.astype(out_ref.dtype)

    return kernel


# ------------------------------ Forward wrapper ------------------------------

def forward(slab, x, *, layout, block_batch=None):
    """Fused forward.  block_batch=None -> single gridless call (small batch);
    block_batch=int -> 1-D parallel grid over batch tiles (large batch / v7x)."""
    B, in_width = x.shape
    rows = layout["rows"]
    vmem = pltpu.MemorySpace.VMEM

    if block_batch is None:
        kernel = make_fused_kernel(layout, B)
        out = pl.pallas_call(
            kernel,
            out_shape=jax.ShapeDtypeStruct((B, LANES), jnp.float32),
            in_specs=[pl.BlockSpec(memory_space=vmem),
                      pl.BlockSpec(memory_space=vmem)],
            out_specs=pl.BlockSpec(memory_space=vmem),
        )(x, slab)
    else:
        assert B % block_batch == 0
        kernel = make_fused_kernel(layout, block_batch)
        out = pl.pallas_call(
            kernel,
            out_shape=jax.ShapeDtypeStruct((B, LANES), jnp.float32),
            grid=(B // block_batch,),
            in_specs=[pl.BlockSpec((block_batch, in_width), lambda i: (i, 0)),
                      pl.BlockSpec((rows, LANES), lambda i: (0, 0))],
            out_specs=pl.BlockSpec((block_batch, LANES), lambda i: (i, 0)),
            compiler_params=pltpu.CompilerParams(
                dimension_semantics=("parallel",)),
        )(x, slab)

    # Slice the packed head columns back to the per-branch output widths.
    return tuple(out[:, c:c + w] for (c, w) in layout["head_cols"])


# --------------------------- Parameter construction --------------------------

def init_linear(key, fan_in, fan_out):
    k1, k2 = jax.random.split(key)
    bound = 1.0 / jnp.sqrt(jnp.float32(fan_in))
    w = jax.random.uniform(k1, (fan_in, fan_out), jnp.float32, -bound, bound)
    b = jax.random.uniform(k2, (fan_out,), jnp.float32, -bound, bound)
    return w, b


def init_bn_folded(key, n):
    """(scale, shift) for eval-mode BatchNorm1d folded into an affine."""
    k1, k2, k3, k4 = jax.random.split(key, 4)
    gamma = jax.random.uniform(k1, (n,), jnp.float32, 0.5, 1.5)
    beta = jax.random.uniform(k2, (n,), jnp.float32, -0.5, 0.5)
    running_mean = jax.random.uniform(k3, (n,), jnp.float32, -0.5, 0.5)
    running_var = jax.random.uniform(k4, (n,), jnp.float32, 0.5, 1.5)
    scale = gamma / jnp.sqrt(running_var + BN_EPS)
    shift = beta - running_mean * scale
    return scale, shift


def init_params(key, input_shape, hidden_size, intermediate_layers, output_shapes,
                hidden_shape, intermediate_shape):
    """Raw (PyTorch-layout) parameters; used directly by the pure-JAX reference."""
    keys = iter(jax.random.split(key, 256))
    params = {"norm": init_bn_folded(next(keys), input_shape // 2)}

    hidden = []
    for i in range(hidden_size):
        fan_in = input_shape if i == 0 else hidden_shape
        w, b = init_linear(next(keys), fan_in, hidden_shape)
        sc, sh = init_bn_folded(next(keys), hidden_shape)
        hidden.append((w, b, sc, sh))
    params["hidden"] = hidden

    params["intermediate"] = []
    params["output"] = []
    for n_layers, out_shape in zip(intermediate_layers, output_shapes):
        branch = []
        for i in range(n_layers):
            fan_in = hidden_shape if i == 0 else intermediate_shape
            w, b = init_linear(next(keys), fan_in, intermediate_shape)
            sc, sh = init_bn_folded(next(keys), intermediate_shape)
            branch.append((w, b, sc, sh))
        params["intermediate"].append(branch)
        params["output"].append(init_linear(next(keys), intermediate_shape, out_shape))
    return params


def prepare_params(raw, input_shape):
    """Fold every BatchNorm into its downstream weight/bias and pack all
    parameters into one contiguous (8,128)-aligned f32 slab + static layout."""
    f32 = jnp.float32
    half = input_shape // 2
    hidden = raw["hidden"]
    branches = raw["intermediate"]
    heads = raw["output"]
    H = hidden[0][0].shape[1]                       # hidden_shape
    IS = branches[0][0][0].shape[1]                 # intermediate_shape
    n_br = len(branches)
    out_widths = [wo.shape[1] for wo, _ in heads]
    depths = [len(br) for br in branches]
    assert all(d >= 1 for d in depths)
    # Single-tile design: every layer output width must fit in 128 lanes.
    assert H <= LANES and n_br * IS <= LANES and sum(out_widths) <= LANES

    ns, nh = raw["norm"]
    prev_scale = jnp.tile(ns, 2)                    # input BN tiled over both halves
    prev_shift = jnp.tile(nh, 2)

    trunk = []                                      # (k_matmul, W[k_store,128], b[1,128])

    def padded(w_f, b_f, k_matmul, k_store):
        kw, nw = w_f.shape
        wb = jnp.zeros((k_store, LANES), f32).at[:kw, :nw].set(w_f)
        bb = jnp.zeros((1, LANES), f32).at[0, :b_f.shape[0]].set(b_f)
        return (k_matmul, wb, bb)

    # Shared hidden trunk: fold the pending affine (input BN / previous BN)
    # into this layer's weight and bias.
    for i, (w, b, sc, sh) in enumerate(hidden):
        wf = w * prev_scale[:, None]
        bf = prev_shift @ w + b
        if i == 0:
            trunk.append(padded(wf, bf, input_shape, _round8(input_shape)))
        else:
            trunk.append(padded(wf, bf, LANES, LANES))
        prev_scale, prev_shift = sc, sh

    # Merged first intermediate layer of ALL branches (one wider matmul).
    wb = jnp.zeros((LANES, LANES), f32)
    bb = jnp.zeros((LANES,), f32)
    br_scale, br_shift = [], []
    for j, br in enumerate(branches):
        w, b, sc, sh = br[0]
        wb = wb.at[:H, j * IS:(j + 1) * IS].set(w * prev_scale[:, None])
        bb = bb.at[j * IS:(j + 1) * IS].set(prev_shift @ w + b)
        br_scale.append(sc)
        br_shift.append(sh)
    trunk.append((LANES, wb, bb.reshape(1, LANES)))

    # Deeper intermediate layers, merged per depth; finished branches pass
    # through an identity block (values are post-ReLU >= 0, so the extra ReLU
    # is a no-op; their pending BN stays folded into the head).
    for d in range(1, max(depths)):
        wb = jnp.zeros((LANES, LANES), f32)
        bb = jnp.zeros((LANES,), f32)
        for j, br in enumerate(branches):
            lo, hi = j * IS, (j + 1) * IS
            if d < len(br):
                w, b, sc, sh = br[d]
                wb = wb.at[lo:hi, lo:hi].set(w * br_scale[j][:, None])
                bb = bb.at[lo:hi].set(br_shift[j] @ w + b)
                br_scale[j], br_shift[j] = sc, sh
            else:
                wb = wb.at[lo:hi, lo:hi].set(jnp.eye(IS, dtype=f32))
        trunk.append((LANES, wb, bb.reshape(1, LANES)))

    # Merged output heads: branch j's lane-block rows feed its own column slice.
    wb = jnp.zeros((LANES, LANES), f32)
    bb = jnp.zeros((LANES,), f32)
    head_cols, col = [], 0
    for j, (wo, bo) in enumerate(heads):
        o = wo.shape[1]
        wb = wb.at[j * IS:(j + 1) * IS, col:col + o].set(wo * br_scale[j][:, None])
        bb = bb.at[col:col + o].set(br_shift[j] @ wo + bo)
        head_cols.append((col, o))
        col += o
    head = (LANES, wb, bb.reshape(1, LANES))

    # Pack everything into ONE slab: [K weight rows | 8 bias rows] per block,
    # every block start 8-row aligned -> static in-kernel slices stay tile
    # aligned and the whole parameter set moves in a single DMA.
    rows, blocks_meta, off = [], [], 0
    for (k_matmul, w_blk, b_blk) in trunk + [head]:
        k_store = w_blk.shape[0]
        rows.append(w_blk)
        rows.append(jnp.concatenate([b_blk, jnp.zeros((7, LANES), f32)], axis=0))
        blocks_meta.append((off, k_matmul, off + k_store))
        off += k_store + 8
    slab = jnp.concatenate(rows, axis=0)

    layout = {
        "blocks": tuple(blocks_meta[:-1]),
        "head": blocks_meta[-1],
        "head_cols": tuple(head_cols),
        "rows": off,
        "half": half,
    }
    return slab, layout


# --------------------------- Pure-JAX reference ------------------------------

def forward_ref(raw, x):
    half = x.shape[1] // 2
    a, b = x[:, :half], x[:, half:]
    ns, nh = raw["norm"]
    a = a * ns + nh
    b = b * ns + nh
    ab = jnp.concatenate([a, b], axis=1)
    ba = jnp.concatenate([b, a], axis=1)

    def block(h, w, bb, sc, sh):
        return jnp.maximum(h @ w + bb, 0.0) * sc + sh

    def run_hidden(h):
        for (w, bb, sc, sh) in raw["hidden"]:
            h = block(h, w, bb, sc, sh)
        return h

    h_ab, h_ba = run_hidden(ab), run_hidden(ba)
    outs = []
    for branch, (wo, bo) in zip(raw["intermediate"], raw["output"]):
        x1, x2 = h_ab, h_ba
        for (w, bb, sc, sh) in branch:
            x1 = block(x1, w, bb, sc, sh)
            x2 = block(x2, w, bb, sc, sh)
        outs.append(((x1 @ wo + bo) + (x2 @ wo + bo)) * 0.5)
    return tuple(outs)


# ----------------------------------- Main ------------------------------------

if __name__ == "__main__":
    # Module hyper-params (small, consistent with the PyTorch constructor).
    INPUT_SHAPE = 32            # even: chunked into two drug-feature halves
    HIDDEN_SIZE = 2
    INTERMEDIATE_LAYERS = [2, 1]
    OUTPUT_SHAPES = [4, 3]
    HIDDEN_SHAPE = 64
    INTERMEDIATE_SHAPE = 32
    BATCH = 8                   # small batch  -> gridless single call
    BIG_BATCH = 256             # large batch  -> parallel batch grid (v7x 2-TC)

    key = jax.random.PRNGKey(0)
    k_params, k_x, k_xb = jax.random.split(key, 3)
    raw = init_params(k_params, INPUT_SHAPE, HIDDEN_SIZE, INTERMEDIATE_LAYERS,
                      OUTPUT_SHAPES, HIDDEN_SHAPE, INTERMEDIATE_SHAPE)
    slab, layout = prepare_params(raw, INPUT_SHAPE)

    # Small batch: one gridless call, one parameter DMA, one output store.
    x = jax.random.normal(k_x, (BATCH, INPUT_SHAPE), jnp.float32)
    fwd_small = jax.jit(functools.partial(forward, layout=layout, block_batch=None))
    outs = jax.block_until_ready(fwd_small(slab, x))
    refs = forward_ref(raw, x)
    for o, r in zip(outs, refs):
        assert o.shape == r.shape
        assert jnp.allclose(o, r, atol=1e-3, rtol=1e-3), "small-batch mismatch vs reference"

    # Large batch: 1-D "parallel" grid over batch tiles (weights stay resident).
    xb = jax.random.normal(k_xb, (BIG_BATCH, INPUT_SHAPE), jnp.float32)
    fwd_big = jax.jit(functools.partial(forward, layout=layout, block_batch=128))
    outs_b = jax.block_until_ready(fwd_big(slab, xb))
    refs_b = forward_ref(raw, xb)
    for o, r in zip(outs_b, refs_b):
        assert o.shape == r.shape
        assert jnp.allclose(o, r, atol=1e-3, rtol=1e-3), "large-batch mismatch vs reference"

    print("KERNEL_OK")
</pallas_src>

<mosaic_0001>
module attributes {stable_mosaic.version = 11 : i64} {
  func.func @kernel(%arg0: memref<8x32xf32, #tpu.memory_space<vmem>>, %arg1: memref<584x128xf32, #tpu.memory_space<vmem>>, %arg2: memref<8x128xf32, #tpu.memory_space<vmem>>) attributes {dimension_semantics = [], scalar_prefetch = 0 : i64, scratch_operands = 0 : i64, tpu.core_type = #tpu.core_type<tc>} {
    %c0 = arith.constant 0 : index
    %c0_0 = arith.constant 0 : index
    %0 = vector.load %arg0[%c0, %c0_0] : memref<8x32xf32, #tpu.memory_space<vmem>>, vector<8x32xf32>
    %1 = vector.extract_strided_slice %0 {offsets = [0, 16], sizes = [8, 16], strides = [1, 1]} : vector<8x32xf32> to vector<8x16xf32>
    %2 = vector.extract_strided_slice %0 {offsets = [0, 0], sizes = [8, 16], strides = [1, 1]} : vector<8x32xf32> to vector<8x16xf32>
    %3 = tpu.concatenate %1, %2 in 1 : vector<8x16xf32>, vector<8x16xf32> -> vector<8x32xf32>
    %4 = tpu.concatenate %0, %3 in 0 : vector<8x32xf32>, vector<8x32xf32> -> vector<16x32xf32>
    %c0_1 = arith.constant 0 : index
    %c0_2 = arith.constant 0 : index
    %5 = vector.load %arg1[%c0_1, %c0_2] : memref<584x128xf32, #tpu.memory_space<vmem>>, vector<32x128xf32>
    %c32 = arith.constant 32 : index
    %c0_3 = arith.constant 0 : index
    %6 = vector.load %arg1[%c32, %c0_3] : memref<584x128xf32, #tpu.memory_space<vmem>>, vector<1x128xf32>
    %cst = arith.constant dense<0.000000e+00> : vector<16x128xf32>
    %7 = tpu.matmul %4, %5, %cst {dimension_numbers = #tpu.dot_dimension_numbers<[1], [0], [0], [1], [0, 0, 1, 1], [], []>} : vector<16x32xf32>, vector<32x128xf32>, vector<16x128xf32> -> vector<16x128xf32>
    %8 = vector.broadcast %6 : vector<1x128xf32> to vector<16x128xf32>
    %9 = arith.addf %7, %8 : vector<16x128xf32>
    %cst_4 = arith.constant 0.000000e+00 : f32
    %10 = vector.broadcast %cst_4 : f32 to vector<16x128xf32>
    %11 = arith.maximumf %9, %10 : vector<16x128xf32>
    %c40 = arith.constant 40 : index
    %c0_5 = arith.constant 0 : index
    %12 = vector.load %arg1[%c40, %c0_5] : memref<584x128xf32, #tpu.memory_space<vmem>>, vector<128x128xf32>
    %c168 = arith.constant 168 : index
    %c0_6 = arith.constant 0 : index
    %13 = vector.load %arg1[%c168, %c0_6] : memref<584x128xf32, #tpu.memory_space<vmem>>, vector<1x128xf32>
    %cst_7 = arith.constant dense<0.000000e+00> : vector<16x128xf32>
    %14 = tpu.matmul %11, %12, %cst_7 {dimension_numbers = #tpu.dot_dimension_numbers<[1], [0], [0], [1], [0, 0, 1, 1], [], []>} : vector<16x128xf32>, vector<128x128xf32>, vector<16x128xf32> -> vector<16x128xf32>
    %15 = vector.broadcast %13 : vector<1x128xf32> to vector<16x128xf32>
    %16 = arith.addf %14, %15 : vector<16x128xf32>
    %cst_8 = arith.constant 0.000000e+00 : f32
    %17 = vector.broadcast %cst_8 : f32 to vector<16x128xf32>
    %18 = arith.maximumf %16, %17 : vector<16x128xf32>
    %c176 = arith.constant 176 : index
    %c0_9 = arith.constant 0 : index
    %19 = vector.load %arg1[%c176, %c0_9] : memref<584x128xf32, #tpu.memory_space<vmem>>, vector<128x128xf32>
    %c304 = arith.constant 304 : index
    %c0_10 = arith.constant 0 : index
    %20 = vector.load %arg1[%c304, %c0_10] : memref<584x128xf32, #tpu.memory_space<vmem>>, vector<1x128xf32>
    %cst_11 = arith.constant dense<0.000000e+00> : vector<16x128xf32>
    %21 = tpu.matmul %18, %19, %cst_11 {dimension_numbers = #tpu.dot_dimension_numbers<[1], [0], [0], [1], [0, 0, 1, 1], [], []>} : vector<16x128xf32>, vector<128x128xf32>, vector<16x128xf32> -> vector<16x128xf32>
    %22 = vector.broadcast %20 : vector<1x128xf32> to vector<16x128xf32>
    %23 = arith.addf %21, %22 : vector<16x128xf32>
    %cst_12 = arith.constant 0.000000e+00 : f32
    %24 = vector.broadcast %cst_12 : f32 to vector<16x128xf32>
    %25 = arith.maximumf %23, %24 : vector<16x128xf32>
    %c312 = arith.constant 312 : index
    %c0_13 = arith.constant 0 : index
    %26 = vector.load %arg1[%c312, %c0_13] : memref<584x128xf32, #tpu.memory_space<vmem>>, vector<128x128xf32>
    %c440 = arith.constant 440 : index
    %c0_14 = arith.constant 0 : index
    %27 = vector.load %arg1[%c440, %c0_14] : memref<584x128xf32, #tpu.memory_space<vmem>>, vector<1x128xf32>
    %cst_15 = arith.constant dense<0.000000e+00> : vector<16x128xf32>
    %28 = tpu.matmul %25, %26, %cst_15 {dimension_numbers = #tpu.dot_dimension_numbers<[1], [0], [0], [1], [0, 0, 1, 1], [], []>} : vector<16x128xf32>, vector<128x128xf32>, vector<16x128xf32> -> vector<16x128xf32>
    %29 = vector.broadcast %27 : vector<1x128xf32> to vector<16x128xf32>
    %30 = arith.addf %28, %29 : vector<16x128xf32>
    %cst_16 = arith.constant 0.000000e+00 : f32
    %31 = vector.broadcast %cst_16 : f32 to vector<16x128xf32>
    %32 = arith.maximumf %30, %31 : vector<16x128xf32>
    %33 = vector.extract_strided_slice %32 {offsets = [0, 0], sizes = [8, 128], strides = [1, 1]} : vector<16x128xf32> to vector<8x128xf32>
    %34 = vector.extract_strided_slice %32 {offsets = [8, 0], sizes = [8, 128], strides = [1, 1]} : vector<16x128xf32> to vector<8x128xf32>
    %35 = arith.addf %33, %34 : vector<8x128xf32>
    %cst_17 = arith.constant 5.000000e-01 : f32
    %36 = vector.broadcast %cst_17 : f32 to vector<8x128xf32>
    %37 = arith.mulf %35, %36 : vector<8x128xf32>
    %c448 = arith.constant 448 : index
    %c0_18 = arith.constant 0 : index
    %38 = vector.load %arg1[%c448, %c0_18] : memref<584x128xf32, #tpu.memory_space<vmem>>, vector<128x128xf32>
    %c576 = arith.constant 576 : index
    %c0_19 = arith.constant 0 : index
    %39 = vector.load %arg1[%c576, %c0_19] : memref<584x128xf32, #tpu.memory_space<vmem>>, vector<1x128xf32>
    %cst_20 = arith.constant dense<0.000000e+00> : vector<8x128xf32>
    %40 = tpu.matmul %37, %38, %cst_20 {dimension_numbers = #tpu.dot_dimension_numbers<[1], [0], [0], [1], [0, 0, 1, 1], [], []>} : vector<8x128xf32>, vector<128x128xf32>, vector<8x128xf32> -> vector<8x128xf32>
    %41 = vector.broadcast %39 : vector<1x128xf32> to vector<8x128xf32>
    %42 = arith.addf %40, %41 : vector<8x128xf32>
    %c0_21 = arith.constant 0 : index
    %c0_22 = arith.constant 0 : index
    %43 = vector.load %arg2[%c0_21, %c0_22] : memref<8x128xf32, #tpu.memory_space<vmem>>, vector<8x128xf32>
    tpu.vector_store %arg2[%c0_21, %c0_22], %42 {strides = array<i32>} : memref<8x128xf32, #tpu.memory_space<vmem>>, vector<8x128xf32>,
    return
  }
}

</mosaic_0001>

<bundles_post_ra>
// kernel: forward.1
= control target key start
LH: loop header
LB: loop body
LE: loop exit
PB: predicated region body
PF: predicated region fallthrough
CT: control target
= control target key end

     0   :  { %7 = vsyncpa [#allocation3], 0  ;;  %s854_s0 = inlined_call_operand.hbm [shape: f32[8,32], index: 0, kind: input, shape index: {}]   ;;  %s855_s1 = inlined_call_operand.hbm [shape: f32[584,128], index: 1, kind: input, shape index: {}]   ;;  %s856_s2 = inlined_call_operand.vmem [shape: f32[8,128], index: 2, kind: output, shape index: {}]  }
   0x1   :  { %8 = vsyncpa [#allocation5], 0  ;;  %s820_s9 = smov [#allocation2]   ;;  %s821_s11 = smov [#allocation4]  }
   0x2   :  { %s15_s10 = sshll.u32 %s820_s9, 4  ;;  %s24_s12 = sshll.u32 %s821_s11, 4  ;;  %s16_s10 = int_to_ptr.vmem [resolvable:$true] %s15_s10  ;;  %s25_s12 = int_to_ptr.vmem [resolvable:$true] %s24_s12 }
   0x3   :  { %s784_s13 = scalar_lea.vmem %s16_s10, 128  ;;  %p789_p1 = scmp.lt.s32.totalorder %s16_s10, %s16_s10 }
   0x4   :  { %p785_p0 = scmp.ne.s32.totalorder %s16_s10, %s784_s13  ;;  %p790_p2 = scmp.lt.s32.totalorder %s784_s13, %s784_s13 }
   0x6   :  { %p791_p3 = por %p790_p2, %p789_p1 }
   0x8   :  { %p792_p4 = pnand %p791_p3, %p785_p0 }
   0xa   :  { %795 = shalt.err (!%p792_p4)
}
   0xb   :  { %18 = dma.hbm_to_vmem [thread:$0]  %s854_s0, 128, %s16_s10, [#allocation3]  }
   0xc   :  { %s804_s16 = scalar_lea.vmem %s25_s12, 9344  ;;  %p809_p6 = scmp.lt.s32.totalorder %s25_s12, %s25_s12 }
   0xd   :  { %p805_p5 = scmp.ne.s32.totalorder %s25_s12, %s804_s16  ;;  %p810_p7 = scmp.lt.s32.totalorder %s804_s16, %s804_s16 }
   0xf   :  { %p811_p8 = por %p810_p7, %p809_p6 }
  0x11   :  { %p812_p9 = pnand %p811_p8, %p805_p5 }
  0x13   :  { %815 = shalt.err (!%p812_p9)
}
  0x14   :  { %s822_s17 = smov 128   ;;  %s823_s18 = smov 8  }
  0x15   :  { %30 = dma.hbm_to_vmem [thread:$0]  %s855_s1, 9344, %s25_s12, [#allocation5], %s822_s17, %s822_s17, %s823_s18  }
  0x16   :  { %816 = dma.done.wait [#allocation3], 128  }
  0x17   :  { %817 = vsyncadd [#allocation3], 4294967168 }
  0x18   :  { %818 = dma.done.wait [#allocation5], 9344  }
  0x19   :  { %819 = vsyncadd [#allocation5], 4294957952  ;;  %vm56_vm0 = vcmask 261120   ;;  %v37_v0 = vld [vmem:[#allocation2] sm:$0xff]  ;;  %v49_v2 = vld [vmem:[#allocation4 + $0x10] sm:$0xff]  ;;  %s824_s0 = smov 112  }
  0x1a   :  { %v50_v1 = vld [vmem:[#allocation4 + $0x18] sm:$0xff]  ;;  %39 = vrot.lane.b32.xlu0 %v37_v0, %s824_s0  ;;  %v154_v3 = vld [vmem:[#allocation4 + $0xa0] sm:$0xff]  ;;  %v48_v4 = vld [vmem:[#allocation4 + $0x8] sm:$0xff]  ;;  %625 = vmatprep.mubr.msk.f32.mxu0 %vm56_vm0, %v37_v0  ;;  %s825_s1 = smov 16   ;;  %vm45_vm1 = vcmask 130048   ;;  %vm827_vm2 = vmmov 0  }
  0x1b   :  { %617 = vmatprep.subr.mxu0 %v50_v1  ;;  %628 = vmatprep.subr.mxu1 %v154_v3  ;;  %v153_v5 = vld [vmem:[#allocation4 + $0x98] sm:$0xff]  ;;  %v47_v6 = vld [vmem:[#allocation4] sm:$0xff]  ;;  %v152_v7 = vld [vmem:[#allocation4 + $0x90] sm:$0xff] }
  0x1c   :  { %618 = vmatpush3.msra.mxu0 %v50_v1  ;;  %629 = vmatpush3.msra.mxu1 %v154_v3  ;;  %v151_v8 = vld [vmem:[#allocation4 + $0x88] sm:$0xff]  ;;  %v150_v9 = vld [vmem:[#allocation4 + $0x80] sm:$0xff]  ;;  %v149_v10 = vld [vmem:[#allocation4 + $0x78] sm:$0xff] }
  0x1d   :  { %619 = vmatprep.subr.mxu0 %v49_v2  ;;  %630 = vmatprep.subr.mxu1 %v153_v5  ;;  %v148_v11 = vld [vmem:[#allocation4 + $0x70] sm:$0xff]  ;;  %v147_v12 = vld [vmem:[#allocation4 + $0x68] sm:$0xff]  ;;  %v146_v13 = vld [vmem:[#allocation4 + $0x60] sm:$0xff] }
  0x1e   :  { %620 = vmatpush3.msra.mxu0 %v49_v2  ;;  %42 = vrot.lane.b32.xlu0 %v37_v0, %s825_s1  ;;  %v145_v14 = vld [vmem:[#allocation4 + $0x58] sm:$0xff]  ;;  %v144_v15 = vld [vmem:[#allocation4 + $0x50] sm:$0xff]  ;;  %v143_v16 = vld [vmem:[#allocation4 + $0x48] sm:$0xff] }
  0x1f   :  { %621 = vmatprep.subr.mxu0 %v48_v4  ;;  %631 = vmatpush3.msra.mxu1 %v153_v5  ;;  %v142_v20 = vld [vmem:[#allocation4 + $0x40] sm:$0xff]  ;;  %v141_v21 = vld [vmem:[#allocation4 + $0x38] sm:$0xff]  ;;  %v140_v22 = vld [vmem:[#allocation4 + $0x30] sm:$0xff] }
  0x20   :  { %622 = vmatpush3.msra.mxu0 %v48_v4  ;;  %632 = vmatprep.subr.mxu1 %v152_v7  ;;  %v139_v23 = vld [vmem:[#allocation4 + $0x28] sm:$0xff]  ;;  %v251_v25 = vld [vmem:[#allocation4 + $0x120] sm:$0xff]  ;;  %v250_v26 = vld [vmem:[#allocation4 + $0x118] sm:$0xff] }
  0x21   :  { %623 = vmatprep.subr.mxu0 %v47_v6  ;;  %633 = vmatpush3.msra.mxu1 %v152_v7  ;;  %v252_v24 = vld [vmem:[#allocation4 + $0x128] sm:$0xff]  ;;  %v249_v27 = vld [vmem:[#allocation4 + $0x110] sm:$0xff]  ;;  %v247_v29 = vld [vmem:[#allocation4 + $0x100] sm:$0xff]  ;;  %v826_v7 = vmov 0.0  }
  0x22   :  { %624 = vmatpush3.msra.mxu0 %v47_v6  ;;  %634 = vmatprep.subr.mxu1 %v151_v8  ;;  %v248_v28 = vld [vmem:[#allocation4 + $0x108] sm:$0xff]  ;;  %v246_v30 = vld [vmem:[#allocation4 + $0xf8] sm:$0xff]  ;;  %v245_v31 = vld [vmem:[#allocation4 + $0xf0] sm:$0xff] }
  0x23   :  { %635 = vmatpush3.msra.mxu1 %v151_v8  ;;  %663 = vmatprep.subr.mxu0 %v252_v24  ;;  %v244_v32 = vld [vmem:[#allocation4 + $0xe8] sm:$0xff]  ;;  %v243_v33 = vld [vmem:[#allocation4 + $0xe0] sm:$0xff]  ;;  %v242_v34 = vld [vmem:[#allocation4 + $0xd8] sm:$0xff] }
  0x24   :  { %636 = vmatprep.subr.mxu1 %v150_v9  ;;  %v241_v35 = vld [vmem:[#allocation4 + $0xd0] sm:$0xff]  ;;  %v533_v36 = vld [vmem:[#allocation4 + $0x20] ss:$0 sm:$0xff]  ;;  %v240_v43 = vld [vmem:[#allocation4 + $0xc8] sm:$0xff] }
  0x25   :  { %637 = vmatpush3.msra.mxu1 %v150_v9  ;;  %v239_v44 = vld [vmem:[#allocation4 + $0xc0] sm:$0xff]  ;;  %v238_v45 = vld [vmem:[#allocation4 + $0xb8] sm:$0xff]  ;;  %v237_v46 = vld [vmem:[#allocation4 + $0xb0] sm:$0xff] }
  0x26   :  { %638 = vmatprep.subr.mxu1 %v149_v10  ;;  %v350_v47 = vld [vmem:[#allocation4 + $0x1b0] sm:$0xff]  ;;  %v349_v48 = vld [vmem:[#allocation4 + $0x1a8] sm:$0xff]  ;;  %v348_v49 = vld [vmem:[#allocation4 + $0x1a0] sm:$0xff] }
  0x27   :  { %639 = vmatpush3.msra.mxu1 %v149_v10  ;;  %v347_v50 = vld [vmem:[#allocation4 + $0x198] sm:$0xff]  ;;  %v346_v51 = vld [vmem:[#allocation4 + $0x190] sm:$0xff]  ;;  %v345_v52 = vld [vmem:[#allocation4 + $0x188] sm:$0xff] }
  0x28   :  { %640 = vmatprep.subr.mxu1 %v148_v11  ;;  %v344_v53 = vld [vmem:[#allocation4 + $0x180] sm:$0xff]  ;;  %v343_v54 = vld [vmem:[#allocation4 + $0x178] sm:$0xff]  ;;  %v342_v55 = vld [vmem:[#allocation4 + $0x170] sm:$0xff] }
  0x29   :  { %641 = vmatpush3.msra.mxu1 %v148_v11  ;;  %v341_v56 = vld [vmem:[#allocation4 + $0x168] sm:$0xff]  ;;  %v340_v57 = vld [vmem:[#allocation4 + $0x160] sm:$0xff]  ;;  %v339_v58 = vld [vmem:[#allocation4 + $0x158] sm:$0xff] }
  0x2a   :  { %642 = vmatprep.subr.mxu1 %v147_v12  ;;  %v536_v59 = vld [vmem:[#allocation4 + $0xa8] ss:$0 sm:$0xff]  ;;  %v338_v2 = vld [vmem:[#allocation4 + $0x150] sm:$0xff]  ;;  %v336_v4 = vld [vmem:[#allocation4 + $0x140] sm:$0xff] }
  0x2b   :  { %643 = vmatpush3.msra.mxu1 %v147_v12  ;;  %v337_v3 = vld [vmem:[#allocation4 + $0x148] sm:$0xff]  ;;  %v335_v5 = vld [vmem:[#allocation4 + $0x138] sm:$0xff]  ;;  %v449_v8 = vld [vmem:[#allocation4 + $0x230] sm:$0xff] }
  0x2c   :  { %644 = vmatprep.subr.mxu1 %v146_v13  ;;  %v450_v6 = vld [vmem:[#allocation4 + $0x238] sm:$0xff]  ;;  %v448_v9 = vld [vmem:[#allocation4 + $0x228] sm:$0xff]  ;;  %v447_v10 = vld [vmem:[#allocation4 + $0x220] sm:$0xff] }
  0x2d   :  { %645 = vmatpush3.msra.mxu1 %v146_v13  ;;  %v446_v11 = vld [vmem:[#allocation4 + $0x218] sm:$0xff]  ;;  %v445_v12 = vld [vmem:[#allocation4 + $0x210] sm:$0xff]  ;;  %v444_v13 = vld [vmem:[#allocation4 + $0x208] sm:$0xff] }
  0x2e   :  { %646 = vmatprep.subr.mxu1 %v145_v14 }
  0x2f   :  { %647 = vmatpush3.msra.mxu1 %v145_v14  ;;  %v443_v14 = vld [vmem:[#allocation4 + $0x200] sm:$0xff] }
  0x30   :  { %648 = vmatprep.subr.mxu1 %v144_v15 }
  0x31   :  { %649 = vmatpush3.msra.mxu1 %v144_v15  ;;  %v442_v15 = vld [vmem:[#allocation4 + $0x1f8] sm:$0xff] }
  0x32   :  { %650 = vmatprep.subr.mxu1 %v143_v16 }
  0x33   :  { %651 = vmatpush3.msra.mxu1 %v143_v16  ;;  %v441_v16 = vld [vmem:[#allocation4 + $0x1f0] sm:$0xff] }
  0x34   :  { %652 = vmatprep.subr.mxu1 %v142_v20 }
  0x35   :  { %653 = vmatpush3.msra.mxu1 %v142_v20 }
  0x36   :  { %654 = vmatprep.subr.mxu1 %v141_v21 }
  0x37   :  { %655 = vmatpush3.msra.mxu1 %v141_v21 }
  0x38   :  { %656 = vmatprep.subr.mxu1 %v140_v22 }
  0x39   :  { %657 = vmatpush3.msra.mxu1 %v140_v22 }
  0x3a   :  { %658 = vmatprep.subr.mxu1 %v139_v23 }
  0x3b   :  { %659 = vmatpush3.msra.mxu1 %v139_v23 }
  0x3c   :  { %698 = vmatprep.subr.mxu1 %v350_v47 }
  0x8c   :  { %v40_v17 = vpop.permute.xlu0 %39 }
  0x90   :  { %v43_v18 = vpop.permute.xlu0 %42 }
  0x91   :  { %v46_v19 = vsel %vm45_vm1, %v40_v17, %v43_v18  ;;  %v537_v17 = vld [vmem:[#allocation4 + $0x130] ss:$0 sm:$0xff] }
  0x92   :  { %626 = vmatmul.mubr.msk.f32.vlgmr.msra.gmra.mxu0 %vm56_vm0, %v46_v19 }
  0x93   :  { %664 = vmatpush3.msra.mxu0 %v252_v24  ;;  %v440_v24 = vld [vmem:[#allocation4 + $0x1e8] sm:$0xff] }
  0x94   :  { %665 = vmatprep.subr.mxu0 %v251_v25 }
  0x95   :  { %666 = vmatpush3.msra.mxu0 %v251_v25  ;;  %v439_v25 = vld [vmem:[#allocation4 + $0x1e0] sm:$0xff] }
  0x96   :  { %667 = vmatprep.subr.mxu0 %v250_v26 }
  0x97   :  { %668 = vmatpush3.msra.mxu0 %v250_v26  ;;  %v438_v26 = vld [vmem:[#allocation4 + $0x1d8] sm:$0xff] }
  0x98   :  { %669 = vmatprep.subr.mxu0 %v249_v27 }
  0x99   :  { %670 = vmatpush3.msra.mxu0 %v249_v27  ;;  %v437_v27 = vld [vmem:[#allocation4 + $0x1d0] sm:$0xff] }
  0x9a   :  { %671 = vmatprep.subr.mxu0 %v248_v28 }
  0x9b   :  { %672 = vmatpush3.msra.mxu0 %v248_v28  ;;  %v436_v28 = vld [vmem:[#allocation4 + $0x1c8] sm:$0xff] }
  0x9c   :  { %673 = vmatprep.subr.mxu0 %v247_v29 }
  0x9d   :  { %674 = vmatpush3.msra.mxu0 %v247_v29  ;;  %v435_v29 = vld [vmem:[#allocation4 + $0x1c0] sm:$0xff] }
  0x9e   :  { %675 = vmatprep.subr.mxu0 %v246_v30 }
  0x9f   :  { %676 = vmatpush3.msra.mxu0 %v246_v30  ;;  %v538_v30 = vld [vmem:[#allocation4 + $0x1b8] ss:$0 sm:$0xff] }
  0xa0   :  { %677 = vmatprep.subr.mxu0 %v245_v31 }
  0xa1   :  { %678 = vmatpush3.msra.mxu0 %v245_v31 }
  0xa2   :  { %679 = vmatprep.subr.mxu0 %v244_v32 }
  0xa3   :  { %680 = vmatpush3.msra.mxu0 %v244_v32 }
  0xa4   :  { %681 = vmatprep.subr.mxu0 %v243_v33 }
  0xa5   :  { %682 = vmatpush3.msra.mxu0 %v243_v33 }
  0xa6   :  { %683 = vmatprep.subr.mxu0 %v242_v34 }
  0xa7   :  { %684 = vmatpush3.msra.mxu0 %v242_v34 }
  0xa8   :  { %685 = vmatprep.subr.mxu0 %v241_v35 }
  0xa9   :  { %686 = vmatpush3.msra.mxu0 %v241_v35 }
  0xaa   :  { %687 = vmatprep.subr.mxu0 %v240_v43 }
  0xab   :  { %688 = vmatpush3.msra.mxu0 %v240_v43 }
  0xac   :  { %689 = vmatprep.subr.mxu0 %v239_v44 }
  0xad   :  { %690 = vmatpush3.msra.mxu0 %v239_v44 }
  0xae   :  { %691 = vmatprep.subr.mxu0 %v238_v45 }
  0xaf   :  { %692 = vmatpush3.msra.mxu0 %v238_v45 }
  0xb0   :  { %693 = vmatprep.subr.mxu0 %v237_v46 }
  0xb1   :  { %694 = vmatpush3.msra.mxu0 %v237_v46 }
  0xb2   :  { %733 = vmatprep.subr.mxu0 %v826_v7 }
 0x152   :  { %v627_v37 = vpop.f32.mrf.mxu0 }
 0x153   :  { %v134_v38 = vadd.f32 %v627_v37, %v533_v36 }
 0x154   :  { %v128_v39 = vpop.f32.mrf.mxu0 }
 0x155   :  { %v129_v40 = vadd.f32 %v533_v36, %v128_v39  ;;  %v138_v42 = vmax.f32 %v134_v38, 0.0  ;;  %v539_v39 = vld [vmem:[#allocation4 + $0x240] ss:$0 sm:$0xff] }
 0x157   :  { %v137_v41 = vmax.f32 %v129_v40, 0.0 }
 0x159   :  { %660 = vmatprep.mubr.f32.mxu1 %v137_v41 }
 0x15a   :  { %661 = vmatmul.mubr.f32.vlgmr.msra.gmra.mxu1 %v138_v42 }
 0x15b   :  { %699 = vmatpush3.msra.mxu1 %v350_v47 }
 0x15c   :  { %700 = vmatprep.subr.mxu1 %v349_v48 }
 0x15d   :  { %701 = vmatpush3.msra.mxu1 %v349_v48 }
 0x15e   :  { %702 = vmatprep.subr.mxu1 %v348_v49 }
 0x15f   :  { %703 = vmatpush3.msra.mxu1 %v348_v49 }
 0x160   :  { %704 = vmatprep.subr.mxu1 %v347_v50 }
 0x161   :  { %705 = vmatpush3.msra.mxu1 %v347_v50 }
 0x162   :  { %706 = vmatprep.subr.mxu1 %v346_v51 }
 0x163   :  { %707 = vmatpush3.msra.mxu1 %v346_v51 }
 0x164   :  { %708 = vmatprep.subr.mxu1 %v345_v52 }
 0x165   :  { %709 = vmatpush3.msra.mxu1 %v345_v52 }
 0x166   :  { %710 = vmatprep.subr.mxu1 %v344_v53 }
 0x167   :  { %711 = vmatpush3.msra.mxu1 %v344_v53 }
 0x168   :  { %712 = vmatprep.subr.mxu1 %v343_v54 }
 0x169   :  { %713 = vmatpush3.msra.mxu1 %v343_v54 }
 0x16a   :  { %714 = vmatprep.subr.mxu1 %v342_v55 }
 0x16b   :  { %715 = vmatpush3.msra.mxu1 %v342_v55 }
 0x16c   :  { %716 = vmatprep.subr.mxu1 %v341_v56 }
 0x16d   :  { %717 = vmatpush3.msra.mxu1 %v341_v56 }
 0x16e   :  { %718 = vmatprep.subr.mxu1 %v340_v57 }
 0x16f   :  { %719 = vmatpush3.msra.mxu1 %v340_v57 }
 0x170   :  { %720 = vmatprep.subr.mxu1 %v339_v58 }
 0x171   :  { %721 = vmatpush3.msra.mxu1 %v339_v58 }
 0x172   :  { %722 = vmatprep.subr.mxu1 %v338_v2 }
 0x173   :  { %723 = vmatpush3.msra.mxu1 %v338_v2 }
 0x174   :  { %724 = vmatprep.subr.mxu1 %v337_v3 }
 0x175   :  { %725 = vmatpush3.msra.mxu1 %v337_v3 }
 0x176   :  { %726 = vmatprep.subr.mxu1 %v336_v4 }
 0x177   :  { %727 = vmatpush3.msra.mxu1 %v336_v4 }
 0x178   :  { %728 = vmatprep.subr.mxu1 %v335_v5 }
 0x179   :  { %729 = vmatpush3.msra.mxu1 %v335_v5 }
 0x21a   :  { %v662_v60 = vpop.f32.mrf.mxu1 }
 0x21b   :  { %v232_v61 = vadd.f32 %v662_v60, %v536_v59 }
 0x21c   :  { %v226_v62 = vpop.f32.mrf.mxu1 }
 0x21d   :  { %v227_v63 = vadd.f32 %v536_v59, %v226_v62  ;;  %v236_v1 = vmax.f32 %v232_v61, 0.0 }
 0x21f   :  { %v235_v0 = vmax.f32 %v227_v63, 0.0 }
 0x221   :  { %695 = vmatprep.mubr.f32.mxu0 %v235_v0 }
 0x222   :  { %696 = vmatmul.mubr.f32.vlgmr.msra.gmra.mxu0 %v236_v1 }
 0x223   :  { %734 = vmatpush3.msra.mxu0 %v450_v6  ;;  %765 = vmatprep.mubr.msk.f32.mxu0 %vm827_vm2, %v826_v7 }
 0x224   :  { %735 = vmatprep.subr.mxu0 %v826_v7 }
 0x225   :  { %736 = vmatpush3.msra.mxu0 %v449_v8 }
 0x226   :  { %737 = vmatprep.subr.mxu0 %v826_v7 }
 0x227   :  { %738 = vmatpush3.msra.mxu0 %v448_v9 }
 0x228   :  { %739 = vmatprep.subr.mxu0 %v826_v7 }
 0x229   :  { %740 = vmatpush3.msra.mxu0 %v447_v10 }
 0x22a   :  { %741 = vmatprep.subr.mxu0 %v826_v7 }
 0x22b   :  { %742 = vmatpush3.msra.mxu0 %v446_v11 }
 0x22c   :  { %743 = vmatprep.subr.mxu0 %v826_v7 }
 0x22d   :  { %744 = vmatpush3.msra.mxu0 %v445_v12 }
 0x22e   :  { %745 = vmatprep.subr.mxu0 %v826_v7 }
 0x22f   :  { %746 = vmatpush3.msra.mxu0 %v444_v13 }
 0x230   :  { %747 = vmatprep.subr.mxu0 %v826_v7 }
 0x231   :  { %748 = vmatpush3.msra.mxu0 %v443_v14 }
 0x232   :  { %749 = vmatprep.subr.mxu0 %v826_v7 }
 0x233   :  { %750 = vmatpush3.msra.mxu0 %v442_v15 }
 0x234   :  { %751 = vmatprep.subr.mxu0 %v826_v7 }
 0x235   :  { %752 = vmatpush3.msra.mxu0 %v441_v16 }
 0x236   :  { %753 = vmatprep.subr.mxu0 %v826_v7 }
 0x237   :  { %754 = vmatpush3.msra.mxu0 %v440_v24 }
 0x238   :  { %755 = vmatprep.subr.mxu0 %v826_v7 }
 0x239   :  { %756 = vmatpush3.msra.mxu0 %v439_v25 }
 0x23a   :  { %757 = vmatprep.subr.mxu0 %v826_v7 }
 0x23b   :  { %758 = vmatpush3.msra.mxu0 %v438_v26 }
 0x23c   :  { %759 = vmatprep.subr.mxu0 %v826_v7 }
 0x23d   :  { %760 = vmatpush3.msra.mxu0 %v437_v27 }
 0x23e   :  { %761 = vmatprep.subr.mxu0 %v826_v7 }
 0x23f   :  { %762 = vmatpush3.msra.mxu0 %v436_v28 }
 0x240   :  { %763 = vmatprep.subr.mxu0 %v826_v7 }
 0x241   :  { %764 = vmatpush3.msra.mxu0 %v435_v29 }
 0x2e2   :  { %v697_v18 = vpop.f32.mrf.mxu0 }
 0x2e3   :  { %v330_v19 = vadd.f32 %v697_v18, %v537_v17 }
 0x2e4   :  { %v324_v20 = vpop.f32.mrf.mxu0 }
 0x2e5   :  { %v325_v21 = vadd.f32 %v537_v17, %v324_v20  ;;  %v334_v23 = vmax.f32 %v330_v19, 0.0 }
 0x2e7   :  { %v333_v22 = vmax.f32 %v325_v21, 0.0 }
 0x2e9   :  { %730 = vmatprep.mubr.f32.mxu1 %v333_v22 }
 0x2ea   :  { %731 = vmatmul.mubr.f32.vlgmr.msra.gmra.mxu1 %v334_v23 }
 0x3aa   :  { %v732_v31 = vpop.f32.mrf.mxu1 }
 0x3ab   :  { %v428_v32 = vadd.f32 %v732_v31, %v538_v30 }
 0x3ac   :  { %v422_v33 = vpop.f32.mrf.mxu1 }
 0x3ad   :  { %v423_v34 = vadd.f32 %v538_v30, %v422_v33  ;;  %v432_v35 = vmax.f32 %v428_v32, 0.0 }
 0x3af   :  { %v431_v36 = vmax.f32 %v423_v34, 0.0 }
 0x3b1   :  { %v433_v37 = vadd.f32 %v432_v35, %v431_v36 }
 0x3b3   :  { %v434_v38 = vmul.f32 0.5, %v433_v37 }
 0x3b5   :  { %766 = vmatmul.mubr.f32.vlgmr.msra.gmra.mxu0 %v434_v38 }
 0x475   :  { %v522_v40 = vpop.f32.mrf.mxu0 }
 0x476   :  { %v523_v41 = vadd.f32 %v539_v39, %v522_v40 }
 0x477   :  { %v767_v42 = vpop.f32.mrf.mxu0 }
 0x478   :  { %526 = vst [vmem:[%s856_s2] sm:$0xff] %v523_v41 }
 0x479   :  { %531 = vsyncpa [#allocation3], 1 }
 0x47a   :  { %532 = vsyncpa [#allocation5], 1 }

</bundles_post_ra>
